<compile_context>
chip_gen: v7x
topology: tpu7x:2x2x1
jax: 0.10.0
libtpu: 0.0.40
codegen_flags: <defaults>
</compile_context>

<pallas_src>
import functools

import jax
import jax.numpy as jnp
from jax.experimental import pallas as pl
from jax.experimental.pallas import tpu as pltpu


def _focal_kernel(logits_ref, target_ref, alpha_ref, out_ref, acc_ref,
                  *, gamma, spatial_len, needs_mask):
    """One grid step: (C, TL) tile of one image.  Classes on sublanes,
    spatial positions on lanes.  Accumulates per-position losses into a
    (1, TL) vector scratch; reduces to a scalar only at the last tile."""
    j = pl.program_id(1)

    @pl.when(j == 0)
    def _():
        acc_ref[...] = jnp.zeros_like(acc_ref)

    x = logits_ref[0].astype(jnp.float32)              # (C, TL)
    t = target_ref[0]                                  # (1, TL) int32

    # log_softmax over the class axis (sublanes, axis 0)
    m = jnp.max(x, axis=0, keepdims=True)              # (1, TL)
    z = x - m
    lse = jnp.log(jnp.sum(jnp.exp(z), axis=0, keepdims=True))   # (1, TL)

    # one-hot gather along classes via a sublane iota + select (no dynamic gather)
    classes = jax.lax.broadcasted_iota(jnp.int32, x.shape, 0)   # (C, TL)
    onehot = classes == t                                       # (C, TL) bool

    z_t = jnp.sum(jnp.where(onehot, z, 0.0), axis=0, keepdims=True)          # (1, TL)
    logpt = z_t - lse                                                        # (1, TL)
    pt = jnp.exp(logpt)
    at = jnp.sum(jnp.where(onehot, alpha_ref[...], 0.0), axis=0, keepdims=True)  # (1, TL)
    logpt_w = logpt * at

    # Clamp so rounding (pt marginally > 1) can't make (1-pt)**gamma NaN.
    one_minus_pt = jnp.maximum(1.0 - pt, 0.0)

    ig = int(gamma)
    if gamma == ig and ig == 0:
        loss = -logpt_w
    elif gamma == ig and 0 < ig <= 8:
        # integer gamma -> repeated multiply (VALU) instead of pow (EUP log+exp)
        w = one_minus_pt
        for _ in range(ig - 1):
            w = w * one_minus_pt
        loss = -w * logpt_w
    else:
        loss = -(one_minus_pt ** gamma) * logpt_w

    if needs_mask:
        # ragged last spatial tile: mask out-of-range lanes (no jnp.pad in HBM)
        tl = loss.shape[-1]
        lane = jax.lax.broadcasted_iota(jnp.int32, loss.shape, 1)
        loss = jnp.where(j * tl + lane < spatial_len, loss, 0.0)

    acc_ref[...] = acc_ref[...] + loss                 # vector partial, no per-step XLU reduce

    @pl.when(j == pl.num_programs(1) - 1)
    def _():
        out_ref[...] = jnp.sum(acc_ref[...]).reshape(1, 1, 1)


def _pick_spatial_tile(C, L, target_bytes=1 << 20, max_tl=8192):
    """Spatial tile size: keep each logits buffer around ~1 MiB (safe under
    v7x's smaller VMEM with double buffering + temporaries), lane-aligned."""
    tl = max(128, min(max_tl, (target_bytes // (4 * C)) // 128 * 128))
    if tl >= L:
        return L, 1            # single full-width tile (full-dim block is always legal)
    return tl, pl.cdiv(L, tl)


def focal_loss(logits_nchw, target_nhw, alpha=None, gamma=0.0, size_average=True):
    """logits_nchw: (N, C, H, W) float; target_nhw: (N, H, W) int;
    alpha: None | scalar (-> [a, 1-a]) | length-C sequence. Returns scalar loss."""
    N, C, H, W = logits_nchw.shape
    L = H * W

    # Free reshapes only — no HBM transpose, no jnp.pad.
    logits = logits_nchw.reshape(N, C, L)
    target = target_nhw.reshape(N, 1, L).astype(jnp.int32)

    # alpha handling mirrors the PyTorch module.
    if alpha is None:
        alpha_c = jnp.ones((C,), jnp.float32)
    elif isinstance(alpha, (int, float)):
        alpha_c = jnp.array([float(alpha), 1.0 - float(alpha)], jnp.float32)
    else:
        alpha_c = jnp.asarray(alpha, jnp.float32).reshape(-1)
    assert alpha_c.shape[0] == C, "alpha must have one weight per class"
    alpha2 = alpha_c.reshape(C, 1)

    tl, tiles = _pick_spatial_tile(C, L)
    needs_mask = (L % tl) != 0

    kernel = functools.partial(_focal_kernel, gamma=gamma, spatial_len=L,
                               needs_mask=needs_mask)

    partials = pl.pallas_call(
        kernel,
        out_shape=jax.ShapeDtypeStruct((N, 1, 1), jnp.float32),
        grid_spec=pltpu.PrefetchScalarGridSpec(
            num_scalar_prefetch=0,
            grid=(N, tiles),
            in_specs=[
                pl.BlockSpec((1, C, tl), lambda n, j: (n, 0, j)),   # logits tile
                pl.BlockSpec((1, 1, tl), lambda n, j: (n, 0, j)),   # target tile
                pl.BlockSpec((C, 1), lambda n, j: (0, 0)),          # alpha (replicated)
            ],
            out_specs=pl.BlockSpec((1, 1, 1), lambda n, j: (n, 0, 0)),  # per-image partial
            scratch_shapes=[pltpu.VMEM((1, tl), jnp.float32)],
        ),
        compiler_params=pltpu.CompilerParams(
            dimension_semantics=("parallel", "arbitrary")),   # N across cores (v7x), spatial reduce
    )(logits, target, alpha2)

    total = jnp.sum(partials)
    if size_average:
        total = total / (N * L)
    return total


def _focal_loss_ref(logits_nchw, target_nhw, alpha, gamma, size_average):
    N, C, H, W = logits_nchw.shape
    x = jnp.transpose(logits_nchw, (0, 2, 3, 1)).reshape(-1, C)
    t = target_nhw.reshape(-1).astype(jnp.int32)
    logp = jax.nn.log_softmax(x, axis=-1)
    logpt = jnp.take_along_axis(logp, t[:, None], axis=1)[:, 0]
    pt = jnp.exp(logpt)
    at = jnp.asarray(alpha, jnp.float32)[t]
    logpt = logpt * at
    loss = -1.0 * (1.0 - pt) ** gamma * logpt
    return loss.mean() if size_average else loss.sum()


if __name__ == "__main__":
    key = jax.random.PRNGKey(0)
    k1, k2 = jax.random.split(key)

    N, C, H, W = 2, 4, 16, 16
    gamma = 2.0
    alpha = [0.25, 0.25, 0.30, 0.20]   # per-class weights (len C)

    logits = jax.random.normal(k1, (N, C, H, W), dtype=jnp.float32)
    target = jax.random.randint(k2, (N, H, W), 0, C, dtype=jnp.int32)

    out = focal_loss(logits, target, alpha, gamma=gamma, size_average=True)
    out = jax.block_until_ready(out)

    ref = _focal_loss_ref(logits, target, jnp.asarray(alpha, jnp.float32), gamma, True)
    assert jnp.allclose(out, ref, rtol=1e-5, atol=1e-6), (out, ref)

    print("KERNEL_OK")
</pallas_src>

<mosaic_0001>
module attributes {stable_mosaic.version = 11 : i64} {
  func.func @_focal_kernel(%arg0: i32, %arg1: i32, %arg2: memref<1x4x256xf32, #tpu.memory_space<vmem>>, %arg3: memref<1x1x256xi32, #tpu.memory_space<vmem>>, %arg4: memref<4x1xf32, #tpu.memory_space<vmem>>, %arg5: memref<1x1x1xf32, #tpu.memory_space<vmem>>, %arg6: memref<1x256xf32, #tpu.memory_space<vmem>>) attributes {dimension_semantics = [#tpu.dimension_semantics<parallel>, #tpu.dimension_semantics<arbitrary>], iteration_bounds = array<i64: 2, 1>, scalar_prefetch = 0 : i64, scratch_operands = 1 : i64, tpu.core_type = #tpu.core_type<tc>, window_params = [{transform_indices = @transform_0, window_bounds = array<i64: 1, 4, 256>}, {transform_indices = @transform_1, window_bounds = array<i64: 1, 1, 256>}, {pipeline_mode = #tpu.pipeline_mode<synchronous>, transform_indices = @transform_2, window_bounds = array<i64: 4, 1>}, {transform_indices = @transform_3, window_bounds = array<i64: 1, 1, 1>}]} {
    %c0_i32 = arith.constant 0 : i32
    %0 = arith.cmpi eq, %arg1, %c0_i32 : i32
    %1 = arith.extui %0 : i1 to i32
    %c0_i32_0 = arith.constant 0 : i32
    %2 = arith.cmpi ne, %1, %c0_i32_0 : i32
    scf.if %2 {
      %cst_22 = arith.constant 0.000000e+00 : f32
      %46 = vector.broadcast %cst_22 : f32 to vector<1x256xf32>
      %c0_23 = arith.constant 0 : index
      %c0_24 = arith.constant 0 : index
      %47 = vector.load %arg6[%c0_23, %c0_24] : memref<1x256xf32, #tpu.memory_space<vmem>>, vector<1x256xf32>
      tpu.vector_store %arg6[%c0_23, %c0_24], %46 {strides = array<i32>} : memref<1x256xf32, #tpu.memory_space<vmem>>, vector<1x256xf32>,
    } else {
    }
    %c0 = arith.constant 0 : index
    %c0_1 = arith.constant 0 : index
    %c0_2 = arith.constant 0 : index
    %3 = vector.load %arg2[%c0, %c0_1, %c0_2] : memref<1x4x256xf32, #tpu.memory_space<vmem>>, vector<1x4x256xf32>
    %4 = vector.shape_cast %3 : vector<1x4x256xf32> to vector<4x256xf32>
    %c0_3 = arith.constant 0 : index
    %c0_4 = arith.constant 0 : index
    %c0_5 = arith.constant 0 : index
    %5 = vector.load %arg3[%c0_3, %c0_4, %c0_5] : memref<1x1x256xi32, #tpu.memory_space<vmem>>, vector<1x1x256xi32>
    %6 = vector.shape_cast %5 : vector<1x1x256xi32> to vector<1x256xi32>
    %cst = arith.constant dense<0xFF800000> : vector<256xf32>
    %7 = vector.multi_reduction <maximumf>, %4, %cst [0] : vector<4x256xf32> to vector<256xf32>
    %8 = vector.shape_cast %7 : vector<256xf32> to vector<1x256xf32>
    %9 = vector.broadcast %8 : vector<1x256xf32> to vector<4x256xf32>
    %10 = arith.subf %4, %9 : vector<4x256xf32>
    %11 = math.exp %10 : vector<4x256xf32>
    %cst_6 = arith.constant dense<0.000000e+00> : vector<256xf32>
    %12 = vector.multi_reduction <add>, %11, %cst_6 [0] : vector<4x256xf32> to vector<256xf32>
    %13 = vector.shape_cast %12 : vector<256xf32> to vector<1x256xf32>
    %14 = math.log %13 : vector<1x256xf32>
    %15 = tpu.iota {dimensions = array<i32: 0>} : vector<4x256xi32>
    %16 = vector.broadcast %6 : vector<1x256xi32> to vector<4x256xi32>
    %17 = arith.cmpi eq, %15, %16 : vector<4x256xi32>
    %cst_7 = arith.constant 0.000000e+00 : f32
    %18 = vector.broadcast %cst_7 : f32 to vector<4x256xf32>
    %19 = arith.select %17, %10, %18 : vector<4x256xi1>, vector<4x256xf32>
    %cst_8 = arith.constant dense<0.000000e+00> : vector<256xf32>
    %20 = vector.multi_reduction <add>, %19, %cst_8 [0] : vector<4x256xf32> to vector<256xf32>
    %21 = vector.shape_cast %20 : vector<256xf32> to vector<1x256xf32>
    %22 = arith.subf %21, %14 : vector<1x256xf32>
    %23 = math.exp %22 : vector<1x256xf32>
    %c0_9 = arith.constant 0 : index
    %c0_10 = arith.constant 0 : index
    %24 = vector.load %arg4[%c0_9, %c0_10] : memref<4x1xf32, #tpu.memory_space<vmem>>, vector<4x1xf32>
    %cst_11 = arith.constant 0.000000e+00 : f32
    %25 = vector.shape_cast %24 : vector<4x1xf32> to vector<4x1xf32>
    %26 = vector.broadcast %25 : vector<4x1xf32> to vector<4x256xf32>
    %27 = vector.broadcast %cst_11 : f32 to vector<4x256xf32>
    %28 = arith.select %17, %26, %27 : vector<4x256xi1>, vector<4x256xf32>
    %cst_12 = arith.constant dense<0.000000e+00> : vector<256xf32>
    %29 = vector.multi_reduction <add>, %28, %cst_12 [0] : vector<4x256xf32> to vector<256xf32>
    %30 = vector.shape_cast %29 : vector<256xf32> to vector<1x256xf32>
    %31 = arith.mulf %22, %30 : vector<1x256xf32>
    %cst_13 = arith.constant 1.000000e+00 : f32
    %32 = vector.broadcast %cst_13 : f32 to vector<1x256xf32>
    %33 = arith.subf %32, %23 : vector<1x256xf32>
    %cst_14 = arith.constant 0.000000e+00 : f32
    %34 = vector.broadcast %cst_14 : f32 to vector<1x256xf32>
    %35 = arith.maximumf %33, %34 : vector<1x256xf32>
    %36 = arith.mulf %35, %35 : vector<1x256xf32>
    %cst_15 = arith.constant 0.000000e+00 : f32
    %37 = vector.broadcast %cst_15 : f32 to vector<1x256xf32>
    %38 = arith.subf %37, %36 : vector<1x256xf32>
    %39 = arith.mulf %38, %31 : vector<1x256xf32>
    %c0_16 = arith.constant 0 : index
    %c0_17 = arith.constant 0 : index
    %40 = vector.load %arg6[%c0_16, %c0_17] : memref<1x256xf32, #tpu.memory_space<vmem>>, vector<1x256xf32>
    %41 = arith.addf %40, %39 : vector<1x256xf32>
    %c0_18 = arith.constant 0 : index
    %c0_19 = arith.constant 0 : index
    %42 = vector.load %arg6[%c0_18, %c0_19] : memref<1x256xf32, #tpu.memory_space<vmem>>, vector<1x256xf32>
    tpu.vector_store %arg6[%c0_18, %c0_19], %41 {strides = array<i32>} : memref<1x256xf32, #tpu.memory_space<vmem>>, vector<1x256xf32>,
    %c0_i32_20 = arith.constant 0 : i32
    %43 = arith.cmpi eq, %arg1, %c0_i32_20 : i32
    %44 = arith.extui %43 : i1 to i32
    %c0_i32_21 = arith.constant 0 : i32
    %45 = arith.cmpi ne, %44, %c0_i32_21 : i32
    scf.if %45 {
      %c0_22 = arith.constant 0 : index
      %c0_23 = arith.constant 0 : index
      %46 = vector.load %arg6[%c0_22, %c0_23] : memref<1x256xf32, #tpu.memory_space<vmem>>, vector<1x256xf32>
      %47 = vector.shape_cast %46 : vector<1x256xf32> to vector<1x1x256xf32>
      %cst_24 = arith.constant dense<0.000000e+00> : vector<1xf32>
      %48 = vector.multi_reduction <add>, %47, %cst_24 [1, 2] : vector<1x1x256xf32> to vector<1xf32>
      %49 = vector.shape_cast %48 : vector<1xf32> to vector<1x1x1xf32>
      %50 = vector.extract %49[0, 0, 0] : f32 from vector<1x1x1xf32>
      %51 = vector.broadcast %50 : f32 to vector<1x1x1xf32>
      %c0_25 = arith.constant 0 : index
      %c0_26 = arith.constant 0 : index
      %c0_27 = arith.constant 0 : index
      %52 = vector.load %arg5[%c0_25, %c0_26, %c0_27] : memref<1x1x1xf32, #tpu.memory_space<vmem>>, vector<1x1x1xf32>
      tpu.vector_store %arg5[%c0_25, %c0_26, %c0_27], %51 {strides = array<i32>} : memref<1x1x1xf32, #tpu.memory_space<vmem>>, vector<1x1x1xf32>,
    } else {
    }
    return
  }
  func.func @transform_0(%arg0: i32, %arg1: i32) -> (i32, i32, i32) {
    %c0_i32 = arith.constant 0 : i32
    %c0_i32_0 = arith.constant 0 : i32
    return %arg0, %c0_i32, %arg1 : i32, i32, i32
  }
  func.func @transform_1(%arg0: i32, %arg1: i32) -> (i32, i32, i32) {
    %c0_i32 = arith.constant 0 : i32
    %c0_i32_0 = arith.constant 0 : i32
    return %arg0, %c0_i32, %arg1 : i32, i32, i32
  }
  func.func @transform_2(%arg0: i32, %arg1: i32) -> (i32, i32) {
    %c0_i32 = arith.constant 0 : i32
    %c0_i32_0 = arith.constant 0 : i32
    %c0_i32_1 = arith.constant 0 : i32
    return %c0_i32, %c0_i32_0 : i32, i32
  }
  func.func @transform_3(%arg0: i32, %arg1: i32) -> (i32, i32, i32) {
    %c0_i32 = arith.constant 0 : i32
    %c0_i32_0 = arith.constant 0 : i32
    %c0_i32_1 = arith.constant 0 : i32
    return %arg0, %c0_i32, %c0_i32_0 : i32, i32, i32
  }
}

</mosaic_0001>

<bundles_post_ra>
// kernel: tpu_custom_call.1
= control target key start
LH: loop header
LB: loop body
LE: loop exit
PB: predicated region body
PF: predicated region fallthrough
CT: control target
= control target key end

     0   :  { %8 = vsyncpa [#allocation4], 0  ;;  %s869_s0 = inlined_call_operand.hbm [shape: f32[2,4,256], index: 0, kind: input, shape index: {}]   ;;  %s870_s1 = inlined_call_operand.vmem [shape: s32[2,1,256], index: 1, kind: input, shape index: {}]   ;;  %s871_s2 = inlined_call_operand.vmem [shape: f32[4,1], index: 2, kind: input, shape index: {}]   ;;  %s872_s3 = inlined_call_operand.vmem [shape: f32[2,1,1], index: 3, kind: output, shape index: {}]  }
   0x1   :  { %10 = vsyncpa [#allocation4 + $0x1], 0  ;;  %s695_s12 = smov 0   ;;  %s697_s13 = smov 0  }
   0x2   :  { %s699_s14 = smov 0   ;;  %s701_s15 = smov 0  }
   0x3   :  { %s703_s16 = smov 0   ;;  %s705_s17 = smov 0  }
   0x4 LB: > { %s504_s18 = sadd.s32 4294967295, %s669_s17   ;;  %s28_s19 = sadd.s32 1, %s665_s16  ;;  %s669_s17 = sphi %s705_s17, %s16_s17   ;;  %s665_s16 = sphi %s703_s16, %s884_s16   ;;  %s661_s15 = sphi %s701_s15, %s883_s15   ;;  %s657_s14 = sphi %s699_s14, %s882_s14   ;;  %s653_s13 = sphi %s697_s13, %s881_s13   ;;  %s649_s12 = sphi %s695_s12, %s880_s12  }
   0x5   : > { %p30_p0 = scmp.ge.s32.totalorder %s28_s19, 2  ;;  %s37_s20 = sadd.s32 1, %s657_s14 }
   0x6   : > { %p44_p1 = scmp.ne.s32.totalorder %s657_s14, %s653_s13  ;;  %p45_p2 = scmp.eq.s32.totalorder %s669_s17, 0 }
   0x7   : > { %s886_s19 = smov (%p30_p0, %s28_s19), 0  ;;  %p50_p4 = scmp.ne.s32.totalorder %s653_s13, %s649_s12 }
   0x8   : > { %p731_p3 = por %p45_p2, %p44_p1  ;;  %s32_s22 = ssub.s32 %s665_s16, %s886_s19 }
   0x9   : > { %p51_p5 = scmp.eq.s32.totalorder %s504_s18, 0  ;;  %p35_p6 = scmp.eq.s32.totalorder %s32_s22, 0 }
   0xa   : > { %p525_p8 = scmp.lt.s32.totalorder %s669_s17, 2  ;;  %s152_s25 = sand.u32 1, %s657_s14  }
   0xb   : > { %p738_p7 = por %p51_p5, %p50_p4  ;;  %s516_s26 = sshll.u32 %s665_s16, 7 }
   0xc   : > { %s744_s24 = scalar_select %p35_p6, %s657_s14, %s37_s20  }
   0xd   : > { %s508_s27 = sshll.u32 %s152_s25, 3  ;;  %s751_s30 = scalar_lea.hbm %s869_s0, %s516_s26 }
   0xe   : > { %s156_s4 = scalar_lea.vmem [#allocation3], %s508_s27  ;;  %p755_p9 = pnand %p525_p8, %p731_p3 }
   0xf   : > { %s166_s5 = sshll.u32 %s156_s4, 4  ;;  %s153_s7 = scalar_lea.sflag [#allocation4], %s152_s25  ;;  %s759_s5 = int_to_ptr.vmem [resolvable:$true] %s166_s5 }
  0x10   : > { %s589_s8 = scalar_lea.hbm %s751_s30, 128  ;;  %p591_p13 = pneg %p755_p9 }
  0x11   : > { %p590_p12 = scmp.ne.s32.totalorder %s751_s30, %s589_s8  ;;  %s594_s11 = scalar_lea.hbm %s869_s0, 256 }
  0x12   : > { %p595_p2 = scmp.lt.u32.totalorder %s751_s30, %s869_s0  ;;  %p596_p3 = scmp.lt.u32.totalorder %s594_s11, %s589_s8 }
  0x13   : > { %p592_p0 = pnand %p591_p13, %p590_p12  ;;  %p598_p5 = scmp.lt.u32.totalorder %s589_s8, %s751_s30 }
  0x14   : > { %p597_p4 = por %p596_p3, %p595_p2 }
  0x15   : > { %p593_p1 = pneg %p592_p0 }
  0x16   : > { %p599_p6 = por %p598_p5, %p597_p4 }
  0x18   : > { %p600_p8 = pnand %p599_p6, %p593_p1 }
  0x1a   : > { %603 = shalt.err (!%p600_p8)
}
  0x1b   : > { %s604_s20 = scalar_lea.vmem %s759_s5, 128  ;;  %s671_s21 = smov [#allocation3]  }
  0x1c   : > { %p605_p12 = scmp.ne.s32.totalorder %s759_s5, %s604_s20  ;;  %s609_s22 = sshll.u32 %s671_s21, 4  ;;  %s610_s22 = int_to_ptr.vmem [resolvable:$false] %s609_s22 }
  0x1d   : > { %s611_s25 = scalar_lea.vmem %s610_s22, 256  ;;  %p612_p11 = scmp.lt.s32.totalorder %s759_s5, %s610_s22 }
  0x1e   : > { %p607_p0 = pnand %p605_p12, %p591_p13  ;;  %p613_p2 = scmp.lt.s32.totalorder %s611_s25, %s604_s20 }
  0x20   : > { %p608_p10 = pneg %p607_p0  ;;  %p614_p3 = por %p613_p2, %p612_p11 }
  0x22   : > { %p615_p4 = pnand %p614_p3, %p608_p10 }
  0x24   : > { %618 = shalt.err (!%p615_p4)
}
  0x25   : > { %524 = dma.hbm_to_vmem [thread:$0]  (!%p755_p9), %s751_s30, 128, %s759_s5, %s153_s7  }
  0x26   : > { %p876_p1 = scmp.lt.s32.totalorder %s669_s17, 3  ;;  %p877_p5 = scmp.ge.s32.totalorder %s669_s17, 1 }
  0x28   : > { %p184_p13 = pnand %p877_p5, %p876_p1 }
  0x29   : > { %s189_s26 = sand.u32 (!%p184_p13), 1, %s653_s13  }
  0x2a   : > { %187 = sbr.rel (%p184_p13) target bundleno = 425 (0x1a9), region = 32  ;;  %s512_s27 = sshll.u32 (!%p184_p13), %s189_s26, 3 }
  0x2b   : > { %s190_s28 = scalar_lea.sflag (!%p184_p13), [#allocation4], %s189_s26  ;;  %s193_s29 = scalar_lea.vmem (!%p184_p13), [#allocation3], %s512_s27 }
  0x31   : > { %644 = dma.done.wait (%p738_p7), %s190_s28, 128  }
  0x32   : > { %646 = vsyncadd (%p738_p7), %s190_s28, 4294967168  ;;  %v239_v0 = vlaneseq  ;;  %v672_v1 = vmov 0   ;;  %v673_v3 = vmov 0.0   ;;  %v329_v4 = vld [vmem:[%s871_s2] sm:$0xf]  ;;  %vm249_vm1 = vcmask 1043456  }
  0x33   : > { %577 = vset.pattern.permute.xlu0 %v672_v1  ;;  %v244_v5 = vld [vmem:[%s193_s29] sm:$0xff]  ;;  %p224_p7 = scmp.lt.s32.totalorder %s661_s15, 1  ;;  %vm403_vm4 = vcmask 1040384   ;;  %vm417_vm5 = vcmask 0  }
  0x34   : > { %vm797_vm0 = vcmp.lt.s32.totalorder %v239_v0, 256  ;;  %332 = vperm.xlu0 %577, %v329_v4   ;;  %v247_v6 = vcombine.high %v244_v5, %v244_v5  ;;  %v250_v7 = vsel %vm249_vm1, %v244_v5, -inf  ;;  %v813_v26 = vshrl.u32 %v239_v0, 7 }
  0x35   : > { %243 = vst.msk [vmem:[#allocation2] sm:$0x3] %vm797_vm0, %v673_v3  ;;  %v251_v9 = vrot.slane %v250_v7, 4  ;;  %s888_s15 = smov (!%p224_p7, %s661_s15), 1 }
  0x36   : > { %v257_v8 = vsel %vm249_vm1, %v247_v6, -inf  ;;  %s513_s23 = sshll.u32 %s888_s15, 1  ;;  %v296_v29 = vsub.s32 0, %v813_v26  ;;  %v300_v31 = vsub.s32 1, %v813_v26  ;;  %s234_s10 = scalar_lea.vmem %s872_s3, %s888_s15 }
  0x37   : > { %v258_v10 = vrot.slane %v257_v8, 4  ;;  %v252_v11 = vmax.f32 %v250_v7, %v251_v9  ;;  %s230_s7 = scalar_lea.vmem %s870_s1, %s513_s23 }
  0x38   : > { %v245_v32 = vld [vmem:[%s230_s7] sm:$0x3] }
  0x39   : > { %v259_v12 = vmax.f32 %v257_v8, %v258_v10  ;;  %v253_v13 = vrot.slane %v252_v11, 2  ;;  %v297_v35 = vrot.slane %v245_v32, %v296_v29  ;;  %v301_v37 = vrot.slane %v245_v32, %v300_v31 }
  0x3b   : > { %v260_v14 = vrot.slane %v259_v12, 2  ;;  %v254_v15 = vmax.f32 %v252_v11, %v253_v13  ;;  %vm302_vm2 = vcmp.eq.s32.totalorder %v813_v26, %v297_v35  ;;  %vm303_vm3 = vcmp.eq.s32.totalorder %v813_v26, %v301_v37 }
  0x3d   : > { %v261_v16 = vmax.f32 %v259_v12, %v260_v14  ;;  %v255_v17 = vrot.slane %v254_v15, 1 }
  0x3f   : > { %v262_v18 = vrot.slane %v261_v16, 1  ;;  %v256_v19 = vmax.f32 %v254_v15, %v255_v17 }
  0x41   : > { %v263_v20 = vmax.f32 %v261_v16, %v262_v18 }
  0x43   : > { %v266_v21 = vcombine.low %v256_v19, %v263_v20 }
  0x45   : > { %v268_v22 = vsub.f32 %v244_v5, %v266_v21 }
  0x47   : > { %v269_v23 = vmul.f32 1.442695, %v268_v22  ;;  %v305_v39 = vcombine.high %v268_v22, %v268_v22  ;;  %v307_v41 = vsel %vm302_vm2, %v268_v22, 0.0 }
  0x48   : > { %v309_v45 = vsel %vm249_vm1, %v307_v41, 0.0 }
  0x49   : > { %579 = vpow2.f32 %v269_v23  ;;  %v308_v43 = vsel %vm303_vm3, %v305_v39, 0.0  ;;  %v310_v49 = vrot.slane %v309_v45, 4 }
  0x4a   : > { %v316_v46 = vsel %vm249_vm1, %v308_v43, 0.0 }
  0x4b   : > { %v317_v50 = vrot.slane %v316_v46, 4  ;;  %v311_v53 = vadd.f32 %v310_v49, %v309_v45 }
  0x4d   : > { %v318_v54 = vadd.f32 %v317_v50, %v316_v46  ;;  %v312_v55 = vrot.slane %v311_v53, 2 }
  0x4f   : > { %v319_v56 = vrot.slane %v318_v54, 2  ;;  %v313_v57 = vadd.f32 %v312_v55, %v311_v53 }
  0x51   : > { %v320_v58 = vadd.f32 %v319_v56, %v318_v54  ;;  %v314_v59 = vrot.slane %v313_v57, 1 }
  0x53   : > { %v580_v24 = vpop.eup %579  ;;  %v321_v61 = vrot.slane %v320_v58, 1  ;;  %v315_v0 = vadd.f32 %v314_v59, %v313_v57 }
  0x54   : > { %v272_v25 = vcombine.high %v580_v24, %v580_v24  ;;  %v274_v27 = vsel %vm249_vm1, %v580_v24, 0.0 }
  0x55   : > { %v275_v30 = vrot.slane %v274_v27, 4  ;;  %v322_v3 = vadd.f32 %v321_v61, %v320_v58 }
  0x56   : > { %v281_v28 = vsel %vm249_vm1, %v272_v25, 0.0  ;;  %v674_v25 = vmov 1966171168  }
  0x57   : > { %v282_v33 = vrot.slane %v281_v28, 4  ;;  %v276_v34 = vadd.f32 %v275_v30, %v274_v27  ;;  %v368_v27 = vunpack.c.l.s4 %v674_v25 }
  0x59   : > { %v283_v36 = vadd.f32 %v282_v33, %v281_v28  ;;  %v277_v38 = vrot.slane %v276_v34, 2 }
  0x5b   : > { %v284_v40 = vrot.slane %v283_v36, 2  ;;  %v278_v42 = vadd.f32 %v277_v38, %v276_v34 }
  0x5d   : > { %v285_v44 = vadd.f32 %v284_v40, %v283_v36  ;;  %v279_v47 = vrot.slane %v278_v42, 1  ;;  %v369_v36 = vunpack.c.0.s8 %v368_v27 }
  0x5f   : > { %v286_v48 = vrot.slane %v285_v44, 1  ;;  %v280_v51 = vadd.f32 %v279_v47, %v278_v42  ;;  %v372_v43 = vsub.s32 %v369_v36, %v813_v26 }
  0x61   : > { %v287_v52 = vadd.f32 %v286_v48, %v285_v44  ;;  %581 = vlog2.f32 %v280_v51  ;;  %v363_v48 = vld [vmem:[#allocation2] sm:$0x3] }
  0x63   : > { %583 = vlog2.f32 %v287_v52 }
  0x6b   : > { %v582_v60 = vpop.eup %581 }
  0x6c   : > { %v289_v63 = vmul.f32 0.6931472, %v582_v60 }
  0x6d   : > { %v584_v62 = vpop.eup %583 }
  0x6e   : > { %v291_v1 = vmul.f32 0.6931472, %v584_v62  ;;  %v323_v4 = vsub.f32 %v315_v0, %v289_v63 }
  0x70   : > { %v324_v5 = vsub.f32 %v322_v3, %v291_v1  ;;  %v325_v6 = vmul.f32 1.442695, %v323_v4 }
  0x72   : > { %v327_v7 = vmul.f32 1.442695, %v324_v5  ;;  %585 = vpow2.f32 %v325_v6 }
  0x74   : > { %587 = vpow2.f32 %v327_v7 }
  0x7c   : > { %v586_v8 = vpop.eup %585 }
  0x7d   : > { %v353_v13 = vsub.f32 1.0, %v586_v8 }
  0x7e   : > { %v588_v9 = vpop.eup %587 }
  0x7f   : > { %v354_v14 = vsub.f32 1.0, %v588_v9  ;;  %v355_v21 = vmax.f32 %v353_v13, 0.0 }
  0x81   : > { %v356_v22 = vmax.f32 %v354_v14, 0.0  ;;  %v357_v32 = vmul.f32 %v355_v21, %v355_v21 }
  0x83   : > { %v358_v33 = vmul.f32 %v356_v22, %v356_v22  ;;  %v359_v39 = vsub.f32 0.0, %v357_v32 }
  0x85   : > { %v360_v40 = vsub.f32 0.0, %v358_v33 }
  0xb3   : > { %v333_v10 = vpop.permute.xlu0 %332 }
  0xb4   : > { %v335_v11 = vsel %vm302_vm2, %v333_v10, 0.0  ;;  %v336_v12 = vsel %vm303_vm3, %v333_v10, 0.0 }
  0xb5   : > { %v337_v15 = vsel %vm249_vm1, %v335_v11, 0.0  ;;  %v344_v16 = vsel %vm249_vm1, %v336_v12, 0.0 }
  0xb6   : > { %v338_v17 = vrot.slane %v337_v15, 4  ;;  %v345_v18 = vrot.slane %v344_v16, 4 }
  0xb8   : > { %v339_v19 = vadd.f32 %v338_v17, %v337_v15  ;;  %v346_v20 = vadd.f32 %v345_v18, %v344_v16 }
  0xba   : > { %v340_v23 = vrot.slane %v339_v19, 2  ;;  %v347_v24 = vrot.slane %v346_v20, 2 }
  0xbc   : > { %v341_v28 = vadd.f32 %v340_v23, %v339_v19  ;;  %v348_v30 = vadd.f32 %v347_v24, %v346_v20 }
  0xbe   : > { %v342_v34 = vrot.slane %v341_v28, 1  ;;  %v349_v35 = vrot.slane %v348_v30, 1 }
  0xc0   : > { %v343_v37 = vadd.f32 %v342_v34, %v341_v28  ;;  %v350_v38 = vadd.f32 %v349_v35, %v348_v30 }
  0xc2   : > { %v351_v41 = vmul.f32 %v343_v37, %v323_v4  ;;  %v352_v42 = vmul.f32 %v350_v38, %v324_v5 }
  0xc4   : > { %v361_v44 = vmul.f32 %v359_v39, %v351_v41  ;;  %v362_v45 = vmul.f32 %v360_v40, %v352_v42 }
  0xc6   : > { %v366_v46 = vcombine.low %v361_v44, %v362_v45 }
  0xc8   : > { %v373_v47 = vrot.slane %v366_v46, %v372_v43 }
  0xca   : > { %v380_v49 = vrot.slane %v373_v47, %v372_v43 }
  0xcc   : > { %v382_v50 = vadd.f32 %v380_v49, %v363_v48 }
  0xce   : > { %387 = vst.msk [vmem:[#allocation2] sm:$0x3] %vm797_vm0, %v382_v50 }
  0xd5   : > { %v391_v51 = vld [vmem:[#allocation2] sm:$0x3] }
  0xd6   : > { %v396_v52 = vrot.slane %v391_v51, %v296_v29  ;;  %v400_v53 = vrot.slane %v391_v51, %v300_v31 }
  0xd8   : > { %v404_v54 = vsel %vm403_vm4, %v396_v52, 0.0  ;;  %v405_v55 = vsel %vm403_vm4, %v400_v53, 0.0 }
  0xd9   : > { %v406_v56 = vadd.f32 %v405_v55, %v404_v54 }
  0xdb   : > { %407 = vadd.xlane.f32.xlu0 %v406_v56 }
 0x168   : > { %v408_v57 = vpop.xlane.xlu0 %407 }
 0x169   : > { %v409_v58 = vrot.slane %v408_v57, 4 }
 0x16b   : > { %v410_v59 = vadd.f32 %v409_v58, %v408_v57 }
 0x16d   : > { %v411_v60 = vrot.slane %v410_v59, 2 }
 0x16f   : > { %v412_v61 = vadd.f32 %v411_v60, %v410_v59 }
 0x171   : > { %v413_v2 = vrot.slane %v412_v61, 1 }
 0x173   : > { %v414_v62 = vadd.f32 %v413_v2, %v412_v61 }
 0x175   : > { %517 = vpush %v414_v62 }
 0x1a6   : > { %s518_s11 = spop %517 }
 0x1a7   : > { %v416_v26 = vstv %s518_s11 }
 0x1a8   : > { %418 = vst.msk [vmem:[%s234_s10] sm:$0x1] %vm417_vm5, %v416_v26 }
 0x1a9 PF: > { %s16_s17 = sadd.s32 1, %s669_s17   ;;  %s880_s12 = smov %s653_s13 }
 0x1aa   : > { %p13_p9 = scmp.ge.s32.totalorder %s16_s17, 4   ;;  %s881_s13 = smov %s657_s14 }
 0x1ab   : > { %s882_s14 = smov %s744_s24  ;;  %s883_s15 = smov %s665_s16 }
 0x1ac   : > { %s884_s16 = smov %s886_s19  ;;  %15 = sbr.rel (!%p13_p9) target bundleno = 4 (0x4), region = 83 }
 0x1b3   :  { %436 = vsyncpa [#allocation4], 1 }
 0x1b4   :  { %438 = vsyncpa [#allocation4 + $0x1], 1 }

</bundles_post_ra>
